<compile_context>
chip_gen: v5e
topology: v5e:2x2
jax: 0.10.0
libtpu: 0.0.40
codegen_flags: <defaults>
</compile_context>

<pallas_src>
import jax
import jax.numpy as jnp
from jax.experimental import pallas as pl
from jax.experimental.pallas import tpu as pltpu


def cat_relu_kernel(x_ref, o_ref):
    # x_ref: (B, C*D) float32 ; o_ref: (B, 2, C*D) bfloat16
    B, n = x_ref.shape
    # ReLU in f32 first (native VALU on all chips, incl. v5e), single downcast.
    y = jnp.maximum(x_ref[...], 0.0).astype(jnp.bfloat16)
    # One full-tile store: duplicate along the new axis (the "cat" copy).
    o_ref[...] = jnp.broadcast_to(y[:, None, :], (B, 2, n))


def model_forward(x):
    B, C, D = x.shape
    n = C * D
    x_flat = x.reshape(B, n)  # glue: equivalent of torch's .view on the input half

    out3 = pl.pallas_call(
        cat_relu_kernel,
        out_shape=jax.ShapeDtypeStruct((B, 2, n), jnp.bfloat16),
        # Block shapes equal the full array dims, so the (8,128) divisibility
        # rule does not apply despite the tiny lane widths at this size.
        in_specs=[pl.BlockSpec((B, n), lambda: (0, 0),
                               memory_space=pltpu.MemorySpace.VMEM)],
        out_specs=pl.BlockSpec((B, 2, n), lambda: (0, 0, 0),
                               memory_space=pltpu.MemorySpace.VMEM),
    )(x_flat)

    # Free semantic reshape: (B, 2, C*D) row-major == cat(dim=1) then view(B, -1).
    return out3.reshape(B, 2 * n)


if __name__ == "__main__":
    key = jax.random.PRNGKey(0)
    x = jax.random.normal(key, (2, 3, 4), dtype=jnp.float32)

    out = model_forward(x)
    out = jax.block_until_ready(out)

    # pure-JAX reference of the torch semantics
    y_ref = jnp.concatenate((x, x), axis=1).astype(jnp.bfloat16)
    ref = jnp.maximum(y_ref.reshape(y_ref.shape[0], -1), 0)

    assert out.shape == (2, 24), out.shape
    assert out.dtype == jnp.bfloat16, out.dtype
    assert jnp.array_equal(out.astype(jnp.float32), ref.astype(jnp.float32))

    print("KERNEL_OK")
</pallas_src>

<mosaic_0001>
module attributes {stable_mosaic.version = 11 : i64} {
  func.func @cat_relu_kernel(%arg0: memref<2x12xf32, #tpu.memory_space<vmem>>, %arg1: memref<2x2x12xbf16, #tpu.memory_space<vmem>>) attributes {dimension_semantics = [], scalar_prefetch = 0 : i64, scratch_operands = 0 : i64, tpu.core_type = #tpu.core_type<tc>} {
    %c0 = arith.constant 0 : index
    %c0_0 = arith.constant 0 : index
    %0 = vector.load %arg0[%c0, %c0_0] : memref<2x12xf32, #tpu.memory_space<vmem>>, vector<2x12xf32>
    %cst = arith.constant 0.000000e+00 : f32
    %1 = vector.broadcast %cst : f32 to vector<2x12xf32>
    %2 = arith.maximumf %0, %1 : vector<2x12xf32>
    %3 = arith.truncf %2 : vector<2x12xf32> to vector<2x12xbf16>
    %4 = vector.shape_cast %3 : vector<2x12xbf16> to vector<2x1x12xbf16>
    %5 = vector.shape_cast %4 : vector<2x1x12xbf16> to vector<2x1x12xbf16>
    %6 = vector.broadcast %5 : vector<2x1x12xbf16> to vector<2x2x12xbf16>
    %c0_1 = arith.constant 0 : index
    %c0_2 = arith.constant 0 : index
    %c0_3 = arith.constant 0 : index
    %7 = vector.load %arg1[%c0_1, %c0_2, %c0_3] : memref<2x2x12xbf16, #tpu.memory_space<vmem>>, vector<2x2x12xbf16>
    tpu.vector_store %arg1[%c0_1, %c0_2, %c0_3], %6 {strides = array<i32>} : memref<2x2x12xbf16, #tpu.memory_space<vmem>>, vector<2x2x12xbf16>,
    return
  }
}

</mosaic_0001>

<bundles_post_ra>
// kernel: tpu_custom_call.1
= control target key start
LH: loop header
LB: loop body
LE: loop exit
PB: predicated region body
PF: predicated region fallthrough
CT: control target
= control target key end

     0   :  { %6 = vsyncpa [#allocation3], 0  ;;  %s146_s0 = inlined_call_operand.hbm [shape: f32[2,12], index: 0, kind: input, shape index: {}]   ;;  %s147_s1 = inlined_call_operand.hbm [shape: bf16[2,2,12], index: 1, kind: output, shape index: {}]  }
   0x1   :  { %7 = vsyncpa [#allocation4], 0  ;;  %s13_s8 = sshll.u32 %s146_s0, 4  ;;  %s126_s9 = smov [#allocation2]   ;;  %s14_s8 = int_to_ptr.hbm [resolvable:$true] %s13_s8 }
   0x2   :  { %s15_s10 = sshll.u32 %s126_s9, 4  ;;  %s16_s10 = int_to_ptr.vmem [resolvable:$true] %s15_s10 }
   0x3   :  { %18 = dma.hbm_to_vmem [thread:$0]  %s14_s8, 32, %s16_s10, [#allocation3]  }
   0x4   :  { %122 = dma.done.wait [#allocation3], 32  }
   0x5   :  { %123 = vsyncadd [#allocation3], 4294967264  ;;  %v23_v0 = vld [vmem:[#allocation2] sm:$0x3]  ;;  %vm28_vm0 = vcmask 1040384   ;;  %s127_s0 = smov [#allocation5]  }
   0x6   :  { %v24_v1 = vmax.f32 %v23_v0, 0.0  ;;  %s54_s11 = sshll.u32 %s127_s0, 4  ;;  %s56_s14 = sshll.u32 %s147_s1, 4  ;;  %vm47_vm1 = vcmask 90112   ;;  %s55_s11 = int_to_ptr.vmem [resolvable:$true] %s54_s11  ;;  %s57_s14 = int_to_ptr.hbm [resolvable:$true] %s56_s14 }
   0x7   :  { %s128_s15 = smov 16   ;;  %s129_s16 = smov 1  }
   0x8   :  { %v25_v2 = vpack.c.bf16 %v24_v1, %v24_v1 }
   0xa   :  { %v27_v3 = vrot.slane %v25_v2, 3 }
   0xc   :  { %v31_v4 = vsel %vm28_vm0, %v25_v2, %v27_v3 }
   0xd   :  { %v69_v5 = vpack.i.b16 %v31_v4, %v31_v4  ;;  %v34_v6 = vunpack.i.h.s16 %v31_v4 }
   0xf   :  { %v37_v7 = vperm.slane %v69_v5, 0  ;;  %v36_v8 = vpack.i.b16 %v34_v6, %v34_v6 }
  0x11   :  { %v40_v9 = vpack.i.b16 %v37_v7, %v37_v7  ;;  %v38_v10 = vperm.slane %v36_v8, 0 }
  0x13   :  { %v42_v11 = vperm.slane %v40_v9, 0  ;;  %v44_v12 = vpack.i.b16 %v38_v10, %v38_v10 }
  0x15   :  { %48 = vst.msk [vmem:[#allocation5] sm:$0x1] %vm47_vm1, %v42_v11  ;;  %v46_v13 = vperm.slane %v44_v12, 0 }
  0x17   :  { %49 = vst.msk [vmem:[#allocation5 + $0x1] sm:$0x1] %vm47_vm1, %v46_v13 }
  0x18   :  { %62 = dma.vmem_to_hbm [thread:$0]  %s55_s11, 32, %s57_s14, [#allocation4], %s128_s15, %s128_s15, %s129_s16  }
  0x19   :  { %124 = dma.done.wait [#allocation4], 32  }
  0x1a   :  { %125 = vsyncadd [#allocation4], 4294967264 }
  0x1b   :  { %67 = vsyncpa [#allocation3], 1 }
  0x1c   :  { %68 = vsyncpa [#allocation4], 1 }

</bundles_post_ra>
